<compile_context>
chip_gen: v6e
topology: v6e:2x2x1
jax: 0.10.0
libtpu: 0.0.40
codegen_flags: <defaults>
</compile_context>

<pallas_src>
import functools

import numpy as np
import jax
import jax.numpy as jnp
from jax import lax
from jax.experimental import pallas as pl
from jax.experimental.pallas import tpu as pltpu


def _pick_spatial_tile(S_pad, bs, bytes_per_lane, *, ts_max=8192, min_steps=4,
                       vmem_budget=30 * 1024 * 1024):
    """Largest 128-multiple divisor of S_pad (<= ts_max) whose double-buffered
    working set fits the budget; prefer tiles that keep bs*n_t >= min_steps."""
    limit = min(S_pad, ts_max)
    cands = [d for d in range(128, limit + 1, 128)
             if S_pad % d == 0 and 2 * d * bytes_per_lane <= vmem_budget]
    if not cands:
        cands = [128]               # S_pad is always a multiple of 128
    ok = [d for d in cands if bs * (S_pad // d) >= min_steps]
    return max(ok) if ok else max(cands)


def _detect_level_kernel(x_ref, w_ref, c_ref, *out_refs,
                         na, nx, ts, stride, emit_raw):
    """Fused 1x1-conv + YOLO decode for one (batch, spatial-tile) block.

    Orientation: spatial on lanes (lane-dense stores), channels / K on sublanes.
    Rows are band-permuted host-side: [x_0..x_{na-1} | y_* | w_* | h_* | rest].

      x_ref : (C, TS)  activations (channels on sublanes, spatial on lanes)
      w_ref : (K, C)   band-permuted conv weight, K = na*no
      c_ref : (K, 2)   per-row constants: col0 = bias, col1 = anchor*stride
                       (col1 only meaningful on the wh band)
      outs  : optional xraw (K, TS) in input dtype, z (K, TS) f32
    """
    if emit_raw:
        xraw_ref, z_ref = out_refs
    else:
        (z_ref,) = out_refs

    c = c_ref[...]                                    # (K, 2) tiny constant slab

    # 1x1 conv == channel contraction on the MXU, f32 accumulation.
    p = jnp.dot(w_ref[...], x_ref[...], preferred_element_type=jnp.float32)
    p = p + c[:, 0:1]                                 # bias, broadcast along lanes
    if emit_raw:
        xraw_ref[...] = p.astype(xraw_ref.dtype)

    # Grid-cell coordinates for this spatial tile (no (M,2) side input).
    # s = gy*nx + gx; +0.5 makes the floor robust to a 1-ulp division error.
    t = pl.program_id(1)
    lane = lax.broadcasted_iota(jnp.int32, (1, ts), 1).astype(jnp.float32)
    s = lane + (t * ts).astype(jnp.float32)
    gy = jnp.floor((s + 0.5) / jnp.float32(nx))
    gx = s - gy * jnp.float32(nx)

    n2 = 2 * na
    n4 = 4 * na
    awh = c[n2:n4, 1:2]                               # anchor_{w,h} * stride

    # x / y bands:  (sigmoid + grid) * stride      (sigmoid -> EUP)
    z_ref[0:na, :] = ((jax.nn.sigmoid(p[0:na, :]) + gx) * stride).astype(z_ref.dtype)
    z_ref[na:n2, :] = ((jax.nn.sigmoid(p[na:n2, :]) + gy) * stride).astype(z_ref.dtype)
    # wh band:      exp * anchor*stride            (exp only on these 2*na rows)
    z_ref[n2:n4, :] = (jnp.exp(p[n2:n4, :]) * awh).astype(z_ref.dtype)
    # conf + prob:  sigmoid
    z_ref[n4:, :] = jax.nn.sigmoid(p[n4:, :]).astype(z_ref.dtype)


def detect_level_pallas(x_nchw, weight, bias, anchors_level, stride, na, no, *,
                        ts_max=8192, min_steps=4, emit_raw=True):
    """One Detect level. Returns (x_out, z), each (bs, ny, nx, na, no)."""
    bs, C, ny, nx = x_nchw.shape
    K = na * no
    S = ny * nx
    S_pad = ((S + 127) // 128) * 128
    # f32 reconstruction of the spatial index is exact only below 2^24.
    assert S_pad < (1 << 24), "spatial size too large for f32 grid reconstruction"

    # Row-band permutation: [x rows | y rows | w rows | h rows | conf+prob rows].
    perm = np.concatenate([
        np.arange(na) * no + 0,
        np.arange(na) * no + 1,
        np.arange(na) * no + 2,
        np.arange(na) * no + 3,
        (np.arange(na)[:, None] * no + np.arange(4, no)[None, :]).reshape(-1),
    ]).astype(np.int32)
    inv_perm = np.argsort(perm).astype(np.int32)

    # No NCHW->NHWC transpose: free reshape keeps channels on sublanes and
    # spatial on lanes. Zero-pad spatial to a multiple of 128 (lane-dense).
    x_rows = x_nchw.reshape(bs, C, S)
    if S_pad != S:
        x_rows = jnp.pad(x_rows, ((0, 0), (0, 0), (0, S_pad - S)))

    # Band-permuted conv weight; matmul dtype follows the activations
    # (bf16 activations -> bf16 MXU feed, f32 accumulate).
    w = jnp.asarray(weight).reshape(K, C)[perm].astype(x_nchw.dtype)

    # Per-row constants: col0 = bias (permuted), col1 = anchor*stride (wh band).
    anchors_np = np.asarray(anchors_level, dtype=np.float32).reshape(na, 2)
    awh_col = np.ones((K,), np.float32)
    awh_col[2 * na:3 * na] = anchors_np[:, 0] * float(stride)
    awh_col[3 * na:4 * na] = anchors_np[:, 1] * float(stride)
    bias_perm = jnp.asarray(bias, dtype=jnp.float32).reshape(K)[perm]
    consts = jnp.stack([bias_perm, jnp.asarray(awh_col)], axis=1)   # (K, 2)

    raw_dtype = x_nchw.dtype
    in_item = x_rows.dtype.itemsize
    raw_item = jnp.dtype(raw_dtype).itemsize if emit_raw else 0
    bytes_per_lane = C * in_item + K * 4 + K * raw_item

    TS = _pick_spatial_tile(S_pad, bs, bytes_per_lane,
                            ts_max=ts_max, min_steps=min_steps)
    n_t = S_pad // TS
    grid = (bs, n_t)

    # VMEM limit sized from the actual double-buffered working set (safe for
    # v7x's 64 MiB physical VMEM; clamp to 40 MiB).
    resident = K * C * in_item + K * 2 * 4
    vmem_need = 2 * TS * bytes_per_lane + resident + (2 << 20)
    vmem_limit = int(min(max(vmem_need, 8 << 20), 40 << 20))

    kernel = functools.partial(_detect_level_kernel, na=na, nx=nx, ts=TS,
                               stride=float(stride), emit_raw=emit_raw)

    out_shape, out_specs = [], []
    if emit_raw:
        out_shape.append(jax.ShapeDtypeStruct((bs, K, S_pad), raw_dtype))
        out_specs.append(pl.BlockSpec((None, K, TS), lambda b, t: (b, 0, t)))
    out_shape.append(jax.ShapeDtypeStruct((bs, K, S_pad), jnp.float32))
    out_specs.append(pl.BlockSpec((None, K, TS), lambda b, t: (b, 0, t)))

    outs = pl.pallas_call(
        kernel,
        out_shape=tuple(out_shape),
        grid_spec=pltpu.PrefetchScalarGridSpec(
            num_scalar_prefetch=0,
            grid=grid,
            in_specs=[
                pl.BlockSpec((None, C, TS), lambda b, t: (b, 0, t)),  # activations
                pl.BlockSpec((K, C), lambda b, t: (0, 0)),            # weight (resident)
                pl.BlockSpec((K, 2), lambda b, t: (0, 0)),            # row constants
            ],
            out_specs=tuple(out_specs),
        ),
        compiler_params=pltpu.CompilerParams(
            dimension_semantics=("parallel", "parallel"),
            vmem_limit_bytes=vmem_limit,
        ),
    )(x_rows, w, consts)

    if emit_raw:
        xraw_f, z_f = outs
    else:
        (z_f,) = outs

    inv_perm_j = jnp.asarray(inv_perm)

    def _to_module_layout(arr):
        arr = arr[:, :, :S]                                   # drop spatial pad
        arr = jnp.take(arr, inv_perm_j, axis=1)               # undo band permutation
        return arr.reshape(bs, na, no, ny, nx).transpose(0, 3, 4, 1, 2)

    z_out = _to_module_layout(z_f)
    if emit_raw:
        return _to_module_layout(xraw_f), z_out
    return None, z_out


def detect_forward(xs, weights, biases, anchors, strides, na, no,
                   *, training=True, emit_raw=True):
    """Full Detect.forward. training=True -> (tuple(x), tuple(z));
    training=False -> (tuple(x), z concatenated as (bs, -1, no))."""
    x_outs, z_outs = [], []
    for i, x in enumerate(xs):
        xo, zo = detect_level_pallas(x, weights[i], biases[i], anchors[i],
                                     strides[i], na, no, emit_raw=emit_raw)
        x_outs.append(xo)
        z_outs.append(zo)
    if training:
        return tuple(x_outs), tuple(z_outs)
    bs = xs[0].shape[0]
    z_cat = jnp.concatenate([z.reshape(bs, -1, no) for z in z_outs], axis=1)
    return tuple(x_outs), z_cat


def _reference_level(x_nchw, weight, bias, anchors_level, stride, na, no):
    """Pure-JAX f32 reference mirroring the PyTorch module."""
    bs, C, ny, nx = x_nchw.shape
    K = na * no
    xf = x_nchw.astype(jnp.float32)
    wf = jnp.asarray(weight, dtype=jnp.float32).reshape(K, C)
    bf = jnp.asarray(bias, dtype=jnp.float32)
    p = jnp.einsum('bchw,kc->bkhw', xf, wf,
                   precision=lax.Precision.HIGHEST) + bf[None, :, None, None]
    p = p.reshape(bs, na, no, ny, nx).transpose(0, 3, 4, 1, 2)  # (bs,ny,nx,na,no)
    gy, gx = jnp.meshgrid(jnp.arange(ny, dtype=jnp.float32),
                          jnp.arange(nx, dtype=jnp.float32), indexing='ij')
    grid_xy = jnp.stack([gx, gy], axis=-1)[None, :, :, None, :]
    anchors_a = jnp.asarray(anchors_level,
                            dtype=jnp.float32).reshape(na, 2)[None, None, None, :, :]
    pred_xy = (jax.nn.sigmoid(p[..., 0:2]) + grid_xy) * stride
    pred_wh = jnp.exp(p[..., 2:4]) * anchors_a * stride
    pred_conf = jax.nn.sigmoid(p[..., 4:5])
    pred_prob = jax.nn.sigmoid(p[..., 5:])
    z = jnp.concatenate([pred_xy, pred_wh, pred_conf, pred_prob], axis=-1)
    return p, z


if __name__ == "__main__":
    # Small Detect-consistent config: nc=3 -> no=8, 3 levels, na=3 anchors/level.
    nc = 3
    no = nc + 5
    anchors = [[(10., 13.), (16., 30.), (33., 23.)],
               [(30., 61.), (62., 45.), (59., 119.)],
               [(116., 90.), (156., 198.), (373., 326.)]]
    na = len(anchors[0])
    nl = len(anchors)
    strides = [8.0, 16.0, 32.0]
    ch = (16, 32, 64)
    bs = 2
    spatial = [(16, 16), (8, 8), (4, 4)]   # levels 1/2 exercise the 128-pad path

    key = jax.random.PRNGKey(0)
    keys = jax.random.split(key, 3 * nl)

    xs, weights, biases = [], [], []
    for i in range(nl):
        ny, nx = spatial[i]
        # bf16 activations/weights feed the MXU; decode math + z stay f32,
        # raw-conv output is emitted in the activation dtype (bf16).
        xs.append(jax.random.normal(keys[3 * i], (bs, ch[i], ny, nx),
                                    jnp.float32).astype(jnp.bfloat16))
        weights.append((0.05 * jax.random.normal(keys[3 * i + 1], (na * no, ch[i]),
                                                 jnp.float32)).astype(jnp.bfloat16))
        biases.append(0.1 * jax.random.normal(keys[3 * i + 2], (na * no,), jnp.float32))

    x_out, z_out = detect_forward(xs, weights, biases, anchors, strides, na, no)
    jax.block_until_ready(x_out)
    jax.block_until_ready(z_out)

    # Check against a pure-JAX f32 reference of the PyTorch semantics
    # (same bf16-rounded inputs; xraw is bf16 -> looser tolerance).
    for i in range(nl):
        xr, zr = _reference_level(xs[i], weights[i], biases[i], anchors[i],
                                  strides[i], na, no)
        np.testing.assert_allclose(np.asarray(x_out[i], dtype=np.float32),
                                   np.asarray(xr), rtol=2e-2, atol=2e-2)
        np.testing.assert_allclose(np.asarray(z_out[i]), np.asarray(zr),
                                   rtol=1e-3, atol=1e-3)

    # Single-tile (TS = full level) vs default multi-tile consistency (level 0).
    x0_s, z0_s = detect_level_pallas(xs[0], weights[0], biases[0], anchors[0],
                                     strides[0], na, no, min_steps=1)
    np.testing.assert_allclose(np.asarray(x0_s, dtype=np.float32),
                               np.asarray(x_out[0], dtype=np.float32),
                               rtol=1e-5, atol=1e-5)
    np.testing.assert_allclose(np.asarray(z0_s), np.asarray(z_out[0]),
                               rtol=1e-5, atol=1e-5)

    # Pure-f32 path on the smallest (padded) level.
    x2_f32 = xs[2].astype(jnp.float32)
    w2_f32 = weights[2].astype(jnp.float32)
    xo, zo = detect_level_pallas(x2_f32, w2_f32, biases[2], anchors[2],
                                 strides[2], na, no)
    xr, zr = _reference_level(x2_f32, w2_f32, biases[2], anchors[2],
                              strides[2], na, no)
    np.testing.assert_allclose(np.asarray(xo), np.asarray(xr), rtol=1e-4, atol=1e-4)
    np.testing.assert_allclose(np.asarray(zo), np.asarray(zr), rtol=1e-4, atol=1e-4)

    # Inference-only path (no raw-conv output stream).
    _, z2_only = detect_level_pallas(xs[2], weights[2], biases[2], anchors[2],
                                     strides[2], na, no, emit_raw=False)
    np.testing.assert_allclose(np.asarray(z2_only), np.asarray(z_out[2]),
                               rtol=1e-5, atol=1e-5)

    # Inference-mode forward: (tuple(x), z concatenated as (bs, -1, no)).
    x_inf, z_cat = detect_forward(xs, weights, biases, anchors, strides, na, no,
                                  training=False)
    jax.block_until_ready(z_cat)
    n_pred = sum(nyx[0] * nyx[1] * na for nyx in spatial)
    assert z_cat.shape == (bs, n_pred, no)

    print("KERNEL_OK")
</pallas_src>

<mosaic_0001>
module attributes {stable_mosaic.version = 11 : i64} {
  func.func @_detect_level_kernel(%arg0: i32, %arg1: i32, %arg2: memref<1x16x128xbf16, #tpu.memory_space<vmem>>, %arg3: memref<24x16xbf16, #tpu.memory_space<vmem>>, %arg4: memref<24x2xf32, #tpu.memory_space<vmem>>, %arg5: memref<1x24x128xbf16, #tpu.memory_space<vmem>>, %arg6: memref<1x24x128xf32, #tpu.memory_space<vmem>>) attributes {dimension_semantics = [#tpu.dimension_semantics<parallel>, #tpu.dimension_semantics<parallel>], iteration_bounds = array<i64: 2, 2>, scalar_prefetch = 0 : i64, scratch_operands = 0 : i64, tpu.core_type = #tpu.core_type<tc>, window_params = [{transform_indices = @transform_0, window_bounds = array<i64: 1, 16, 128>}, {pipeline_mode = #tpu.pipeline_mode<synchronous>, transform_indices = @transform_1, window_bounds = array<i64: 24, 16>}, {pipeline_mode = #tpu.pipeline_mode<synchronous>, transform_indices = @transform_2, window_bounds = array<i64: 24, 2>}, {transform_indices = @transform_3, window_bounds = array<i64: 1, 24, 128>}, {transform_indices = @transform_4, window_bounds = array<i64: 1, 24, 128>}]} {
    %c0 = arith.constant 0 : index
    %c0_0 = arith.constant 0 : index
    %0 = vector.load %arg4[%c0, %c0_0] : memref<24x2xf32, #tpu.memory_space<vmem>>, vector<24x2xf32>
    %c0_1 = arith.constant 0 : index
    %c0_2 = arith.constant 0 : index
    %1 = vector.load %arg3[%c0_1, %c0_2] : memref<24x16xbf16, #tpu.memory_space<vmem>>, vector<24x16xbf16>
    %c0_3 = arith.constant 0 : index
    %c0_4 = arith.constant 0 : index
    %c0_5 = arith.constant 0 : index
    %2 = vector.load %arg2[%c0_3, %c0_4, %c0_5] : memref<1x16x128xbf16, #tpu.memory_space<vmem>>, vector<1x16x128xbf16>
    %3 = vector.shape_cast %2 : vector<1x16x128xbf16> to vector<16x128xbf16>
    %cst = arith.constant dense<0.000000e+00> : vector<24x128xf32>
    %4 = tpu.matmul %1, %3, %cst {dimension_numbers = #tpu.dot_dimension_numbers<[1], [0], [0], [1], [0, 0, 1, 1], [], []>} : vector<24x16xbf16>, vector<16x128xbf16>, vector<24x128xf32> -> vector<24x128xf32>
    %5 = vector.extract_strided_slice %0 {offsets = [0, 0], sizes = [24, 1], strides = [1, 1]} : vector<24x2xf32> to vector<24x1xf32>
    %6 = vector.broadcast %5 : vector<24x1xf32> to vector<24x128xf32>
    %7 = arith.addf %4, %6 : vector<24x128xf32>
    %8 = arith.truncf %7 : vector<24x128xf32> to vector<24x128xbf16>
    %c0_6 = arith.constant 0 : index
    %c0_7 = arith.constant 0 : index
    %c0_8 = arith.constant 0 : index
    %9 = vector.load %arg5[%c0_6, %c0_7, %c0_8] : memref<1x24x128xbf16, #tpu.memory_space<vmem>>, vector<1x24x128xbf16>
    %10 = vector.shape_cast %9 : vector<1x24x128xbf16> to vector<24x128xbf16>
    %11 = vector.shape_cast %8 : vector<24x128xbf16> to vector<1x24x128xbf16>
    tpu.vector_store %arg5[%c0_6, %c0_7, %c0_8], %11 {strides = array<i32>} : memref<1x24x128xbf16, #tpu.memory_space<vmem>>, vector<1x24x128xbf16>,
    %12 = tpu.iota {dimensions = array<i32: 1>} : vector<1x128xi32>
    %13 = arith.sitofp %12 : vector<1x128xi32> to vector<1x128xf32>
    %c128_i32 = arith.constant 128 : i32
    %14 = arith.muli %arg1, %c128_i32 : i32
    %15 = arith.sitofp %14 : i32 to f32
    %16 = vector.broadcast %15 : f32 to vector<1x128xf32>
    %17 = arith.addf %13, %16 : vector<1x128xf32>
    %cst_9 = arith.constant 5.000000e-01 : f32
    %18 = vector.broadcast %cst_9 : f32 to vector<1x128xf32>
    %19 = arith.addf %17, %18 : vector<1x128xf32>
    %cst_10 = arith.constant 1.600000e+01 : f32
    %20 = vector.broadcast %cst_10 : f32 to vector<1x128xf32>
    %21 = arith.divf %19, %20 : vector<1x128xf32>
    %22 = math.floor %21 : vector<1x128xf32>
    %cst_11 = arith.constant 1.600000e+01 : f32
    %23 = vector.broadcast %cst_11 : f32 to vector<1x128xf32>
    %24 = arith.mulf %22, %23 : vector<1x128xf32>
    %25 = arith.subf %17, %24 : vector<1x128xf32>
    %26 = vector.extract_strided_slice %0 {offsets = [6, 1], sizes = [6, 1], strides = [1, 1]} : vector<24x2xf32> to vector<6x1xf32>
    %27 = vector.extract_strided_slice %7 {offsets = [0, 0], sizes = [3, 128], strides = [1, 1]} : vector<24x128xf32> to vector<3x128xf32>
    %28 = arith.negf %27 : vector<3x128xf32>
    %29 = math.exp %28 : vector<3x128xf32>
    %cst_12 = arith.constant 1.000000e+00 : f32
    %30 = vector.broadcast %cst_12 : f32 to vector<3x128xf32>
    %31 = arith.addf %30, %29 : vector<3x128xf32>
    %32 = arith.divf %30, %31 : vector<3x128xf32>
    %33 = vector.broadcast %25 : vector<1x128xf32> to vector<3x128xf32>
    %34 = arith.addf %32, %33 : vector<3x128xf32>
    %cst_13 = arith.constant 8.000000e+00 : f32
    %35 = vector.broadcast %cst_13 : f32 to vector<3x128xf32>
    %36 = arith.mulf %34, %35 : vector<3x128xf32>
    %c0_14 = arith.constant 0 : index
    %c0_15 = arith.constant 0 : index
    %c0_16 = arith.constant 0 : index
    %37 = vector.load %arg6[%c0_14, %c0_15, %c0_16] : memref<1x24x128xf32, #tpu.memory_space<vmem>>, vector<1x3x128xf32>
    %38 = vector.shape_cast %37 : vector<1x3x128xf32> to vector<3x128xf32>
    %39 = vector.shape_cast %36 : vector<3x128xf32> to vector<1x3x128xf32>
    tpu.vector_store %arg6[%c0_14, %c0_15, %c0_16], %39 {strides = array<i32>} : memref<1x24x128xf32, #tpu.memory_space<vmem>>, vector<1x3x128xf32>,
    %40 = vector.extract_strided_slice %7 {offsets = [3, 0], sizes = [3, 128], strides = [1, 1]} : vector<24x128xf32> to vector<3x128xf32>
    %41 = arith.negf %40 : vector<3x128xf32>
    %42 = math.exp %41 : vector<3x128xf32>
    %cst_17 = arith.constant 1.000000e+00 : f32
    %43 = vector.broadcast %cst_17 : f32 to vector<3x128xf32>
    %44 = arith.addf %43, %42 : vector<3x128xf32>
    %45 = arith.divf %43, %44 : vector<3x128xf32>
    %46 = vector.broadcast %22 : vector<1x128xf32> to vector<3x128xf32>
    %47 = arith.addf %45, %46 : vector<3x128xf32>
    %cst_18 = arith.constant 8.000000e+00 : f32
    %48 = vector.broadcast %cst_18 : f32 to vector<3x128xf32>
    %49 = arith.mulf %47, %48 : vector<3x128xf32>
    %c0_19 = arith.constant 0 : index
    %c3 = arith.constant 3 : index
    %c0_20 = arith.constant 0 : index
    %50 = vector.load %arg6[%c0_19, %c3, %c0_20] : memref<1x24x128xf32, #tpu.memory_space<vmem>>, vector<1x3x128xf32>
    %51 = vector.shape_cast %50 : vector<1x3x128xf32> to vector<3x128xf32>
    %52 = vector.shape_cast %49 : vector<3x128xf32> to vector<1x3x128xf32>
    tpu.vector_store %arg6[%c0_19, %c3, %c0_20], %52 {strides = array<i32>} : memref<1x24x128xf32, #tpu.memory_space<vmem>>, vector<1x3x128xf32>,
    %53 = vector.extract_strided_slice %7 {offsets = [6, 0], sizes = [6, 128], strides = [1, 1]} : vector<24x128xf32> to vector<6x128xf32>
    %54 = math.exp %53 : vector<6x128xf32>
    %55 = vector.broadcast %26 : vector<6x1xf32> to vector<6x128xf32>
    %56 = arith.mulf %54, %55 : vector<6x128xf32>
    %c0_21 = arith.constant 0 : index
    %c6 = arith.constant 6 : index
    %c0_22 = arith.constant 0 : index
    %57 = vector.load %arg6[%c0_21, %c6, %c0_22] : memref<1x24x128xf32, #tpu.memory_space<vmem>>, vector<1x6x128xf32>
    %58 = vector.shape_cast %57 : vector<1x6x128xf32> to vector<6x128xf32>
    %59 = vector.shape_cast %56 : vector<6x128xf32> to vector<1x6x128xf32>
    tpu.vector_store %arg6[%c0_21, %c6, %c0_22], %59 {strides = array<i32>} : memref<1x24x128xf32, #tpu.memory_space<vmem>>, vector<1x6x128xf32>,
    %60 = vector.extract_strided_slice %7 {offsets = [12, 0], sizes = [12, 128], strides = [1, 1]} : vector<24x128xf32> to vector<12x128xf32>
    %61 = arith.negf %60 : vector<12x128xf32>
    %62 = math.exp %61 : vector<12x128xf32>
    %cst_23 = arith.constant 1.000000e+00 : f32
    %63 = vector.broadcast %cst_23 : f32 to vector<12x128xf32>
    %64 = arith.addf %63, %62 : vector<12x128xf32>
    %65 = arith.divf %63, %64 : vector<12x128xf32>
    %c0_24 = arith.constant 0 : index
    %c12 = arith.constant 12 : index
    %c0_25 = arith.constant 0 : index
    %66 = vector.load %arg6[%c0_24, %c12, %c0_25] : memref<1x24x128xf32, #tpu.memory_space<vmem>>, vector<1x12x128xf32>
    %67 = vector.shape_cast %66 : vector<1x12x128xf32> to vector<12x128xf32>
    %68 = vector.shape_cast %65 : vector<12x128xf32> to vector<1x12x128xf32>
    tpu.vector_store %arg6[%c0_24, %c12, %c0_25], %68 {strides = array<i32>} : memref<1x24x128xf32, #tpu.memory_space<vmem>>, vector<1x12x128xf32>,
    return
  }
  func.func @transform_0(%arg0: i32, %arg1: i32) -> (i32, i32, i32) {
    %c0_i32 = arith.constant 0 : i32
    %c0_i32_0 = arith.constant 0 : i32
    return %arg0, %c0_i32, %arg1 : i32, i32, i32
  }
  func.func @transform_1(%arg0: i32, %arg1: i32) -> (i32, i32) {
    %c0_i32 = arith.constant 0 : i32
    %c0_i32_0 = arith.constant 0 : i32
    %c0_i32_1 = arith.constant 0 : i32
    return %c0_i32, %c0_i32_0 : i32, i32
  }
  func.func @transform_2(%arg0: i32, %arg1: i32) -> (i32, i32) {
    %c0_i32 = arith.constant 0 : i32
    %c0_i32_0 = arith.constant 0 : i32
    %c0_i32_1 = arith.constant 0 : i32
    return %c0_i32, %c0_i32_0 : i32, i32
  }
  func.func @transform_3(%arg0: i32, %arg1: i32) -> (i32, i32, i32) {
    %c0_i32 = arith.constant 0 : i32
    %c0_i32_0 = arith.constant 0 : i32
    return %arg0, %c0_i32, %arg1 : i32, i32, i32
  }
  func.func @transform_4(%arg0: i32, %arg1: i32) -> (i32, i32, i32) {
    %c0_i32 = arith.constant 0 : i32
    %c0_i32_0 = arith.constant 0 : i32
    return %arg0, %c0_i32, %arg1 : i32, i32, i32
  }
}

</mosaic_0001>

<bundles_post_ra>
// kernel: tpu_custom_call.1
= control target key start
LH: loop header
LB: loop body
LE: loop exit
PB: predicated region body
PF: predicated region fallthrough
CT: control target
= control target key end

     0   :  { %10 = vsyncpa [#allocation4], 0  ;;  %s1110_s0 = inlined_call_operand.vmem [shape: bf16[2,16,256], index: 0, kind: input, shape index: {}]   ;;  %s1111_s1 = inlined_call_operand.vmem [shape: bf16[24,16], index: 1, kind: input, shape index: {}]   ;;  %s1112_s2 = inlined_call_operand.vmem [shape: f32[24,2], index: 2, kind: input, shape index: {}]   ;;  %s1113_s3 = inlined_call_operand.hbm [shape: bf16[2,24,256], index: 3, kind: output, shape index: {0}]   ;;  %s1114_s4 = inlined_call_operand.hbm [shape: f32[2,24,256], index: 4, kind: output, shape index: {1}]  }
   0x1   :  { %12 = vsyncpa [#allocation4 + $0x1], 0 }
   0x2   :  { %13 = vsyncpa [#allocation6], 0 }
   0x3   :  { %15 = vsyncpa [#allocation6 + $0x1], 0  ;;  %s902_s15 = smov 0   ;;  %s904_s16 = smov 0  }
   0x4   :  { %s906_s17 = smov 0   ;;  %s908_s18 = smov 0  }
   0x5   :  { %s910_s19 = smov 0   ;;  %s912_s20 = smov 0  }
   0x6   :  { %s914_s21 = smov 0   ;;  %s916_s22 = smov 0  }
   0x7 LB: > { %s592_s23 = sadd.s32 4294967295, %s866_s22   ;;  %s593_s24 = sadd.s32 4294967294, %s866_s22   ;;  %s866_s22 = sphi %s916_s22, %s21_s22   ;;  %s862_s21 = sphi %s914_s21, %s1124_s21   ;;  %s858_s20 = sphi %s912_s20, %s1123_s20   ;;  %s854_s19 = sphi %s910_s19, %s1122_s19   ;;  %s850_s18 = sphi %s908_s18, %s1121_s18   ;;  %s846_s17 = sphi %s906_s17, %s1120_s17   ;;  %s842_s16 = sphi %s904_s16, %s1119_s16   ;;  %s838_s15 = sphi %s902_s15, %s1118_s15  }
   0x8   : > { %s30_s25 = sadd.s32 1, %s858_s20  ;;  %s33_s26 = sadd.s32 1, %s862_s21 }
   0x9   : > { %p31_p0 = scmp.ge.s32.totalorder %s30_s25, 2  ;;  %p49_p1 = scmp.ne.s32.totalorder %s846_s17, %s842_s16 }
   0xa   : > { %p50_p2 = scmp.eq.s32.totalorder %s866_s22, 0  ;;  %p123_p5 = scmp.eq.s32.totalorder %s592_s23, 3 }
   0xb   : > { %s1126_s25 = smov (%p31_p0, %s30_s25), 0  ;;  %s1128_s26 = smov (!%p31_p0, %s33_s26), %s862_s21 }
   0xc   : > { %s38_s27 = ssub.s32 %s858_s20, %s1126_s25  ;;  %p954_p3 = por %p50_p2, %p49_p1 }
   0xd   : > { %p35_p4 = scmp.ge.s32.totalorder %s1128_s26, 2  ;;  %p128_p6 = scmp.ne.s32.totalorder %s842_s16, %s838_s15 }
   0xe   : > { %p129_p7 = scmp.eq.s32.totalorder %s593_s24, 3  ;;  %p962_p8 = por %p123_p5, %p49_p1 }
   0xf   : > { %s1130_s26 = smov (%p35_p4, %s1128_s26), 0  ;;  %s42_s7 = sadd.s32 1, %s846_s17 }
  0x10   : > { %p966_p9 = por %p129_p7, %p128_p6  ;;  %s37_s5 = ssub.s32 %s862_s21, %s1130_s26 }
  0x11   : > { %s39_s6 = sor.u32 %s38_s27, %s37_s5  ;;  %p595_p11 = scmp.ge.s32.totalorder %s866_s22, 4 }
  0x12   : > { %p40_p10 = scmp.eq.s32.totalorder %s39_s6, 0 }
  0x13   : > { %179 = sbr.rel (%p595_p11) target bundleno = 31 (0x1f), region = 24 }
  0x14   : > { %s974_s8 = scalar_select %p40_p10, %s846_s17, %s42_s7  }
  0x18   : > { %182 = sbr.rel (!%p954_p3) target bundleno = 31 (0x1f), region = 28  ;;  %s184_s9 = sand.u32 (%p954_p3), 1, %s846_s17  }
  0x19   : > { %s597_s10 = sshll.u32 (%p954_p3), %s862_s21, 2  ;;  %s596_s11 = sshll.u32 (%p954_p3), %s184_s9, 3 }
  0x1a   : > { %s188_s12 = sadd.s32 (%p954_p3), %s858_s20, %s597_s10  ;;  %s186_s27 = scalar_lea.vmem (%p954_p3), [#allocation2], %s596_s11 }
  0x1b   : > { %s598_s13 = sshll.u32 (%p954_p3), %s188_s12, 2 }
  0x1c   : > { %s190_s24 = scalar_lea.vmem (%p954_p3), %s1110_s0, %s598_s13 }
  0x1d   : > { %v207_v0 = vld [vmem:[%s190_s24] sm:$0xf]  ;;  %v209_v1 = vld [vmem:[%s190_s24 + $0x8] sm:$0xf] }
  0x1e   : > { %208 = vst [vmem:[%s186_s27] sm:$0xf] %v207_v0  ;;  %210 = vst [vmem:[%s186_s27 + $0x4] sm:$0xf] %v209_v1 }
  0x1f PF: > { %p599_p12 = scmp.ge.s32.totalorder %s866_s22, 1  ;;  %p237_p13 = scmp.lt.s32.totalorder %s866_s22, 5 }
  0x21   : > { %p238_p0 = pnand %p599_p12, %p237_p13 }
  0x22   : > { %s988_s28 = sand.u32 (!%p238_p0), 1, %s842_s16   ;;  %s636_s6 = smul.u32 (!%p238_p0), 6, %s854_s19 }
  0x23   : > { %241 = sbr.rel (%p238_p0) target bundleno = 299 (0x12b), region = 69  ;;  %s600_s7 = sshll.u32 (!%p238_p0), %s988_s28, 3 }
  0x24   : > { %s246_s13 = scalar_lea.vmem (!%p238_p0), [#allocation2], %s600_s7  ;;  %s634_s5 = smul.u32 (!%p238_p0), 12, %s988_s28 }
  0x25   : > { %s1011_s7 = sadd.s32 (!%p238_p0), %s850_s18, %s636_s6  ;;  %s609_s9 = sshll.u32 (!%p238_p0), %s850_s18, 7 }
  0x26   : > { %s266_s10 = scalar_lea.vmem (!%p238_p0), [#allocation3], %s634_s5  ;;  %s613_s19 = sshll.u32 (!%p238_p0), %s1011_s7, 6 }
  0x27   : > { %s458_s11 = sshll.u32 (!%p238_p0), %s266_s10, 4  ;;  %s1015_s12 = scvt.s32.f32 (!%p238_p0), %s609_s9  ;;  %s1017_s11 = int_to_ptr.vmem [resolvable:$true] %s458_s11 }
  0x28   : > { %v726_v2 = vld [vmem:[%s1111_s1] sm:$0xff]   ;;  %vm312_vm0 = vcmask 130048   ;;  %v868_v3 = vmov 0   ;;  %v277_v5 = vld [vmem:[%s1112_s2 + $0x10] sm:$0xff]  ;;  %v276_v7 = vld [vmem:[%s1112_s2 + $0x8] sm:$0xff]  ;;  %v869_v9 = vmov 1   ;;  %v383_v14 = vlaneseq  ;;  %s1022_s14 = scalar_lea.hbm %s1113_s3, %s613_s19 }
  0x29   : > { %630 = vmatprep.mubr.msk.bf16.mxu0 %vm312_vm0, %v726_v2  ;;  %721 = vset.pattern.permute.xlu0 %v868_v3  ;;  %v275_v4 = vld [vmem:[%s1112_s2] sm:$0xff]  ;;  %v727_v8 = vld [vmem:[%s1111_s1 + $0x8] ss:$0 sps:$4 sm:$0xff]   ;;  %v388_v30 = vstv %s1015_s12  ;;  %s439_s23 = scalar_lea.sflag [#allocation4], %s988_s28  ;;  %s744_s24 = scalar_lea.vmem %s1017_s11, 192 }
  0x2a   : > { %v725_v6 = vld [vmem:[%s246_s13] sm:$0xff]   ;;  %285 = vperm.xlu0 %721, %v275_v4   ;;  %722 = vset.pattern.permute.xlu1 %v868_v3  ;;  %v384_v20 = vand.u32 127, %v383_v14  ;;  %p745_p1 = scmp.ne.s32.totalorder %s1017_s11, %s744_s24  ;;  %s870_s27 = smov [#allocation3]  }
  0x2b   : > { %295 = vperm.xlu1 %722, %v277_v5   ;;  %628 = vmatprep.subr.bf16.mxu0 %v725_v6  ;;  %s748_s5 = sshll.u32 %s870_s27, 4  ;;  %s749_s5 = int_to_ptr.vmem [resolvable:$false] %s748_s5 }
  0x2c   : > { %629 = vmatpush3.bf16.msra.mxu0 %v725_v6  ;;  %v385_v26 = vcvt.s32.f32 %v384_v20  ;;  %p746_p2 = pnand %p745_p1, %p962_p8  ;;  %s750_s6 = scalar_lea.vmem %s749_s5, 384 }
  0x2d   : > { %p751_p4 = scmp.lt.s32.totalorder %s1017_s11, %s749_s5  ;;  %p752_p5 = scmp.lt.s32.totalorder %s750_s6, %s744_s24 }
  0x2e   : > { %290 = vperm.xlu0 %721, %v276_v7   ;;  %p747_p3 = pneg %p746_p2 }
  0x2f   : > { %723 = vset.pattern.permute.xlu1 %v869_v9  ;;  %631 = vmatmul.mubr.msk.bf16.vlgmr.msra.gmra.mxu0 %vm312_vm0, %v727_v8  ;;  %p753_p6 = por %p752_p5, %p751_p4 }
  0x30   : > { %413 = vperm.xlu1 %723, %v275_v4  }
  0x31   : > { %p754_p7 = pnand %p753_p6, %p747_p3 }
  0x32   : > { %724 = vset.pattern.permute.xlu0 %v869_v9 }
  0x33   : > { %417 = vperm.xlu0 %724, %v276_v7  }
  0xa5   : > { %v286_v11 = vpop.permute.xlu0 %285 }
  0xa6   : > { %v296_v10 = vpop.permute.xlu1 %295 }
  0xa9   : > { %v291_v23 = vpop.permute.xlu0 %290 }
  0xef   : > { %v632_v12 = vpop.f32.mrf.mxu0 }
  0xf0   : > { %v362_v13 = vadd.f32 %v632_v12, %v296_v10 }
  0xf1   : > { %v353_v15 = vpop.f32.mrf.mxu0 }
  0xf2   : > { %v619_v16 = vpack.c.bf16 %v362_v13, %v362_v13  ;;  %v612_v17 = vmul.f32 -1.442695, %v362_v13  ;;  %v354_v18 = vadd.f32 %v353_v15, %v286_v11 }
  0xf3   : > { %v633_v19 = vpop.f32.mrf.mxu0 }
  0xf4   : > { %382 = vst [vmem:[%s266_s10 + $0x8] sm:$0xf] %v619_v16  ;;  %728 = vpow2.f32 %v612_v17  ;;  %v610_v21 = vmul.f32 -1.442695, %v354_v18  ;;  %v408_v22 = vmul.f32 1.442695, %v354_v18 }
  0xf5   : > { %v356_v24 = vpop.f32.mrf.mxu0 }
  0xf6   : > { %730 = vpow2.f32 %v610_v21  ;;  %v357_v25 = vadd.f32 %v356_v24, %v291_v23 }
  0xf7   : > { %732 = vpow2.f32 %v408_v22 }
  0xf8   : > { %v623_v27 = vpack.c.bf16 %v357_v25, %v354_v18  ;;  %v410_v28 = vmul.f32 1.442695, %v357_v25  ;;  %v611_v29 = vmul.f32 -1.442695, %v357_v25 }
  0xfa   : > { %624 = vst [vmem:[%s266_s10] sm:$0xff] %v623_v27   ;;  %734 = vpow2.f32 %v410_v28 }
  0xfb   : > { %736 = vpow2.f32 %v611_v29 }
  0xfc   : > { %757 = shalt.err (!%p754_p7)
}
  0xfd   : > { %s758_s9 = scalar_lea.hbm %s1022_s14, 192  ;;  %s762_s12 = scalar_lea.hbm %s1113_s3, 768 }
  0xfe   : > { %p759_p10 = scmp.ne.s32.totalorder %s1022_s14, %s758_s9  ;;  %p763_p13 = scmp.lt.s32.totalorder %s1022_s14, %s1113_s3 }
  0xff   : > { %p764_p0 = scmp.lt.s32.totalorder %s762_s12, %s758_s9 }
 0x100   : > { %p760_p11 = pnand %p759_p10, %p962_p8 }
 0x101   : > { %p765_p1 = por %p764_p0, %p763_p13 }
 0x102   : > { %p761_p12 = pneg %p760_p11 }
 0x104   : > { %p766_p2 = pnand %p765_p1, %p761_p12 }
 0x106   : > { %769 = shalt.err (!%p766_p2)
}
 0x107   : > { %s871_s24 = smov 64   ;;  %s872_s27 = smov 128   ;;  %v389_v31 = vadd.f32 %v388_v30, %v385_v26  ;;  %v729_v33 = vpop.eup %728  ;;  %v414_v35 = vpop.permute.xlu1 %413 }
 0x108   : > { %s873_s5 = smov 4   ;;  %s635_s6 = smul.u32 24, %s988_s28  ;;  %v431_v34 = vadd.f32 1.0, %v729_v33  ;;  %v731_v36 = vpop.eup %730  ;;  %v418_v41 = vpop.permute.xlu0 %417 }
 0x109   : > { %638 = dma.vmem_to_hbm [thread:$0]  (%p962_p8), %s1017_s11, 192, %s1022_s14, %s439_s23, %s871_s24, %s872_s27, %s873_s5   ;;  %v390_v32 = vadd.f32 0.5, %v389_v31  ;;  %v733_v37 = vpop.eup %732  ;;  %v399_v39 = vadd.f32 1.0, %v731_v36 }
 0x10a   : > { %738 = vrcp.f32 %v431_v34  ;;  %v420_v40 = vmul.f32 %v733_v37, %v414_v35  ;;  %v735_v42 = vpop.eup %734  ;;  %s273_s9 = scalar_lea.vmem [#allocation5], %s635_s6  ;;  %s614_s14 = sshll.u32 %s1011_s7, 7 }
 0x10b   : > { %v392_v38 = vmul.f32 0.0625, %v390_v32  ;;  %740 = vrcp.f32 %v399_v39  ;;  %v737_v43 = vpop.eup %736  ;;  %v421_v45 = vmul.f32 %v735_v42, %v418_v41  ;;  %s475_s11 = sshll.u32 %s273_s9, 4  ;;  %s1056_s19 = scalar_lea.hbm %s1114_s4, %s614_s14  ;;  %s1051_s11 = int_to_ptr.vmem [resolvable:$true] %s475_s11 }
 0x10c   : > { %422 = vst [vmem:[%s273_s9] sm:$0xc0] %v420_v40  ;;  %v430_v46 = vadd.f32 1.0, %v737_v43  ;;  %s444_s12 = scalar_lea.sflag [#allocation6], %s988_s28  ;;  %s770_s18 = scalar_lea.vmem %s1051_s11, 384 }
 0x10d   : > { %v393_v44 = vfloor.f32 %v392_v38  ;;  %423 = vst [vmem:[%s273_s9 + $0x8] sm:$0xf] %v421_v45  ;;  %p771_p3 = scmp.ne.s32.totalorder %s1051_s11, %s770_s18  ;;  %s874_s7 = smov [#allocation5]  }
 0x10e   : > { %742 = vrcp.f32 %v430_v46  ;;  %s774_s13 = sshll.u32 %s874_s7, 4  ;;  %s775_s13 = int_to_ptr.vmem [resolvable:$false] %s774_s13 }
 0x10f   : > { %v394_v47 = vmul.f32 16.0, %v393_v44  ;;  %p772_p4 = pnand %p771_p3, %p962_p8  ;;  %s776_s24 = scalar_lea.vmem %s775_s13, 768 }
 0x110   : > { %p777_p6 = scmp.lt.s32.totalorder %s1051_s11, %s775_s13  ;;  %p778_p7 = scmp.lt.s32.totalorder %s776_s24, %s770_s18 }
 0x111   : > { %v395_v48 = vsub.f32 %v389_v31, %v394_v47  ;;  %p773_p5 = pneg %p772_p4 }
 0x112   : > { %p779_p10 = por %p778_p7, %p777_p6 }
 0x114   : > { %p780_p11 = pnand %p779_p10, %p773_p5 }
 0x117   : > { %v739_v49 = vpop.eup %738 }
 0x118   : > { %437 = vst [vmem:[%s273_s9 + $0x10] sm:$0xff] %v739_v49  ;;  %v741_v50 = vpop.eup %740 }
 0x119   : > { %v402_v51 = vadd.f32 %v741_v50, %v395_v48  ;;  %v405_v52 = vadd.f32 %v741_v50, %v393_v44 }
 0x11b   : > { %v403_v53 = vmul.f32 8.0, %v402_v51  ;;  %v406_v54 = vmul.f32 8.0, %v405_v52  ;;  %v743_v55 = vpop.eup %742 }
 0x11c   : > { %436 = vst [vmem:[%s273_s9 + $0x8] sm:$0xf0] %v743_v55 }
 0x11d   : > { %404 = vst [vmem:[%s273_s9] sm:$0x7] %v403_v53  ;;  %407 = vst [vmem:[%s273_s9] sm:$0x38] %v406_v54 }
 0x11e   : > { %783 = shalt.err (!%p780_p11)
}
 0x11f   : > { %s784_s5 = scalar_lea.hbm %s1056_s19, 384  ;;  %s788_s14 = scalar_lea.hbm %s1114_s4, 1536 }
 0x120   : > { %p785_p12 = scmp.ne.s32.totalorder %s1056_s19, %s784_s5  ;;  %p789_p1 = scmp.lt.s32.totalorder %s1056_s19, %s1114_s4 }
 0x121   : > { %p790_p2 = scmp.lt.s32.totalorder %s788_s14, %s784_s5 }
 0x122   : > { %p786_p13 = pnand %p785_p12, %p962_p8 }
 0x123   : > { %p791_p3 = por %p790_p2, %p789_p1 }
 0x124   : > { %p787_p0 = pneg %p786_p13 }
 0x126   : > { %p792_p4 = pnand %p791_p3, %p787_p0 }
 0x128   : > { %795 = shalt.err (!%p792_p4)
}
 0x129   : > { %s875_s18 = smov 256   ;;  %s876_s7 = smov 8  }
 0x12a   : > { %639 = dma.vmem_to_hbm [thread:$0]  (%p962_p8), %s1051_s11, 384, %s1056_s19, %s444_s12, %s872_s27, %s875_s18, %s876_s7  }
 0x12b PF: > { %p649_p5 = scmp.ge.s32.totalorder %s866_s22, 2  ;;  %s490_s13 = sand.u32 1, %s838_s15  }
 0x12c   : > { %s491_s24 = scalar_lea.sflag [#allocation4], %s490_s13 }
 0x12d   : > { %p643_p6 = pnand %p649_p5, %p966_p9 }
 0x12f   : > { %p644_p7 = pneg %p643_p6 }
 0x131   : > { %829 = dma.done.wait (%p644_p7), %s491_s24, 192  }
 0x132   : > { %831 = vsyncadd (%p644_p7), %s491_s24, 4294967104  ;;  %s500_s5 = scalar_lea.sflag [#allocation6], %s490_s13 }
 0x133   : > { %833 = dma.done.wait (%p644_p7), %s500_s5, 384  }
 0x134   : > { %835 = vsyncadd (%p644_p7), %s500_s5, 4294966912  ;;  %s21_s22 = sadd.s32 1, %s866_s22   ;;  %s1118_s15 = smov %s842_s16 }
 0x135   : > { %p18_p10 = scmp.ge.s32.totalorder %s21_s22, 6   ;;  %s1119_s16 = smov %s846_s17 }
 0x136   : > { %s1120_s17 = smov %s974_s8  ;;  %s1121_s18 = smov %s858_s20 }
 0x137   : > { %s1122_s19 = smov %s862_s21  ;;  %s1123_s20 = smov %s1126_s25 }
 0x138   : > { %s1124_s21 = smov %s1130_s26  ;;  %20 = sbr.rel (!%p18_p10) target bundleno = 7 (0x7), region = 130 }
 0x13d   :  { %505 = vsyncpa [#allocation4], 1 }
 0x13e   :  { %507 = vsyncpa [#allocation4 + $0x1], 1 }
 0x13f   :  { %508 = vsyncpa [#allocation6], 1 }
 0x140   :  { %510 = vsyncpa [#allocation6 + $0x1], 1 }

</bundles_post_ra>
